<compile_context>
chip_gen: v7x
topology: tpu7x:2x2x1
jax: 0.10.0
libtpu: 0.0.40
codegen_flags: <defaults>
</compile_context>

<pallas_src>
import jax
import jax.numpy as jnp
import numpy as np
from jax.experimental import pallas as pl
from jax.experimental.pallas import tpu as pltpu


def attention_kernel(enc_ref, hid_ref, we_t_ref, wh_t_ref, bv_ref, out_ref):
    """One grid step = one batch block (Bt batch elements, full src_len).

    VMEM block shapes:
      enc_ref:  [Bt, S, E2]  batch-major encoder states
      hid_ref:  [Bt, D]      decoder hidden states
      we_t_ref: [E2, D]      W_e^T  (attn.weight[:, D:]^T)
      wh_t_ref: [D, D]       W_h^T  (attn.weight[:, :D]^T)
      bv_ref:   [2, D]       row 0 = attn.bias, row 1 = v.weight
      out_ref:  [Bt, 1, S]   softmax over src_len (src_len on the lane axis)
    """
    Bt, S, E2 = enc_ref.shape
    D = wh_t_ref.shape[0]

    # (1) Encoder projection: ONE batched MXU pass over all (b, s) rows.
    #     [Bt*S, E2] @ [E2, D]   (M = Bt*S sublanes, N = D lanes).
    enc_rows = enc_ref[...].reshape(Bt * S, E2)
    enc_proj = jnp.dot(enc_rows, we_t_ref[...], preferred_element_type=jnp.float32)

    # (2) Hidden projection: a single [Bt, D] @ [D, D] matmul for the whole
    #     block; fold the attn bias in here (a [Bt, D] add) so it is NOT
    #     re-added across the src_len broadcast below.
    hid_proj = jnp.dot(hid_ref[...], wh_t_ref[...], preferred_element_type=jnp.float32)
    hid_proj = hid_proj + bv_ref[0:1, :]                         # [Bt, D]

    # (3) energy = tanh(W_e e_s + (W_h h + b)); hidden term broadcast over S.
    energy = jnp.tanh(enc_proj.reshape(Bt, S, D) + hid_proj[:, None, :])  # [Bt,S,D] f32

    # (4) v-projection as a tiny batched matmul.  It also moves src_len from
    #     sublanes onto lanes, so the softmax and the output store below are
    #     lane-oriented with no extra relayout / transpose.
    v_b = jnp.broadcast_to(bv_ref[1:2, :][None, :, :], (Bt, 1, D))
    att = jnp.einsum("bod,bsd->bos", v_b, energy,
                     preferred_element_type=jnp.float32)         # [Bt, 1, S]

    # (5) softmax over src_len (lane axis); reciprocal on the EUP, not a divide.
    m = jnp.max(att, axis=-1, keepdims=True)
    e = jnp.exp(att - m)
    denom = jnp.sum(e, axis=-1, keepdims=True)
    out_ref[...] = (e * pl.reciprocal(denom, approx=True)).astype(out_ref.dtype)


def attention_forward(hidden, encoder_outputs, attn_w, attn_b, v_w, *, block_b=None):
    """hidden: [B, D], encoder_outputs: [S, B, E2] (PyTorch axis convention)."""
    S, B, E2 = encoder_outputs.shape
    D = hidden.shape[1]
    if block_b is None:
        block_b = B                      # whole batch in one grid step
    assert B % block_b == 0, "batch block must divide batch size"
    # NOTE: sub-blocking the batch (block_b < B) additionally wants
    # block_b % 8 == 0 to satisfy the (8, 128) block-shape rule on `hidden`.

    # Layout plumbing (all tiny except the encoder permute, which mirrors the
    # module's own `encoder_outputs.permute(1, 0, 2)`; in a full model it would
    # be fused into the encoder producer).
    enc_bse = jnp.transpose(encoder_outputs, (1, 0, 2))          # [B, S, E2]
    W_h_t = jnp.transpose(attn_w[:, :D])                         # [D, D]
    W_e_t = jnp.transpose(attn_w[:, D:])                         # [E2, D]
    bias_v = jnp.concatenate(
        [attn_b.reshape(1, D), v_w.reshape(1, D)], axis=0)       # [2, D]

    out3 = pl.pallas_call(
        attention_kernel,
        out_shape=jax.ShapeDtypeStruct((B, 1, S), jnp.float32),
        grid=(B // block_b,),
        in_specs=[
            pl.BlockSpec((block_b, S, E2), lambda i: (i, 0, 0)),  # encoder block
            pl.BlockSpec((block_b, D), lambda i: (i, 0)),         # hidden block
            pl.BlockSpec((E2, D), lambda i: (0, 0)),              # W_e^T (replicated)
            pl.BlockSpec((D, D), lambda i: (0, 0)),               # W_h^T (replicated)
            pl.BlockSpec((2, D), lambda i: (0, 0)),               # [bias; v] (replicated)
        ],
        out_specs=pl.BlockSpec((block_b, 1, S), lambda i: (i, 0, 0)),
        compiler_params=pltpu.CompilerParams(
            dimension_semantics=("parallel",),   # batch-block axis; spans both
        ),                                       # TensorCores on v7x when >1 block
    )(enc_bse, hidden, W_e_t, W_h_t, bias_v)

    return out3.reshape(B, S)                    # free reshape: drop singleton axis


def attention_reference(hidden, encoder_outputs, attn_w, attn_b, v_w):
    """Pure-JAX mirror of the PyTorch forward (for validation)."""
    S, B, _ = encoder_outputs.shape
    hid_rep = jnp.repeat(hidden[:, None, :], S, axis=1)          # [B, S, D]
    enc = jnp.transpose(encoder_outputs, (1, 0, 2))              # [B, S, E2]
    cat = jnp.concatenate([hid_rep, enc], axis=2)                # [B, S, D+E2]
    energy = jnp.tanh(jnp.einsum("bsk,dk->bsd", cat, attn_w) + attn_b)
    att = jnp.einsum("bsd,od->bso", energy, v_w)[..., 0]         # [B, S]
    return jax.nn.softmax(att, axis=1)


if __name__ == "__main__":
    # Small deterministic shapes consistent with the module.
    enc_hid_dim = 32
    dec_hid_dim = 32
    E2 = 2 * enc_hid_dim
    B = 2
    S = 8

    key = jax.random.PRNGKey(0)
    k_hid, k_enc, k_w, k_b, k_v = jax.random.split(key, 5)

    # Parameter init with the same shapes as nn.Linear in the module
    # (uniform(-1/sqrt(fan_in), 1/sqrt(fan_in)) like PyTorch's default).
    fan_attn = E2 + dec_hid_dim
    attn_w = jax.random.uniform(
        k_w, (dec_hid_dim, fan_attn), jnp.float32,
        minval=-1.0 / np.sqrt(fan_attn), maxval=1.0 / np.sqrt(fan_attn))
    attn_b = jax.random.uniform(
        k_b, (dec_hid_dim,), jnp.float32,
        minval=-1.0 / np.sqrt(fan_attn), maxval=1.0 / np.sqrt(fan_attn))
    v_w = jax.random.uniform(
        k_v, (1, dec_hid_dim), jnp.float32,
        minval=-1.0 / np.sqrt(dec_hid_dim), maxval=1.0 / np.sqrt(dec_hid_dim))

    hidden = jax.random.normal(k_hid, (B, dec_hid_dim), jnp.float32)
    encoder_outputs = jax.random.normal(k_enc, (S, B, E2), jnp.float32)

    out = attention_forward(hidden, encoder_outputs, attn_w, attn_b, v_w)
    out = jax.block_until_ready(out)

    ref = attention_reference(hidden, encoder_outputs, attn_w, attn_b, v_w)
    # Tolerance loosened slightly because the softmax uses the EUP approximate
    # reciprocal (pl.reciprocal(..., approx=True)).
    np.testing.assert_allclose(np.asarray(out), np.asarray(ref), rtol=2e-3, atol=2e-3)
    assert out.shape == (B, S)

    print("KERNEL_OK")
</pallas_src>

<mosaic_0001>
module attributes {stable_mosaic.version = 11 : i64} {
  func.func @attention_kernel(%arg0: i32, %arg1: memref<2x8x64xf32, #tpu.memory_space<vmem>>, %arg2: memref<2x32xf32, #tpu.memory_space<vmem>>, %arg3: memref<64x32xf32, #tpu.memory_space<vmem>>, %arg4: memref<32x32xf32, #tpu.memory_space<vmem>>, %arg5: memref<2x32xf32, #tpu.memory_space<vmem>>, %arg6: memref<2x1x8xf32, #tpu.memory_space<vmem>>) attributes {dimension_semantics = [#tpu.dimension_semantics<parallel>], iteration_bounds = array<i64: 1>, scalar_prefetch = 0 : i64, scratch_operands = 0 : i64, tpu.core_type = #tpu.core_type<tc>, window_params = [{transform_indices = @transform_0, window_bounds = array<i64: 2, 8, 64>}, {transform_indices = @transform_1, window_bounds = array<i64: 2, 32>}, {pipeline_mode = #tpu.pipeline_mode<synchronous>, transform_indices = @transform_2, window_bounds = array<i64: 64, 32>}, {pipeline_mode = #tpu.pipeline_mode<synchronous>, transform_indices = @transform_3, window_bounds = array<i64: 32, 32>}, {pipeline_mode = #tpu.pipeline_mode<synchronous>, transform_indices = @transform_4, window_bounds = array<i64: 2, 32>}, {transform_indices = @transform_5, window_bounds = array<i64: 2, 1, 8>}]} {
    %c0 = arith.constant 0 : index
    %c0_0 = arith.constant 0 : index
    %c0_1 = arith.constant 0 : index
    %0 = vector.load %arg1[%c0, %c0_0, %c0_1] : memref<2x8x64xf32, #tpu.memory_space<vmem>>, vector<2x8x64xf32>
    %1 = vector.shape_cast %0 : vector<2x8x64xf32> to vector<16x64xf32>
    %c0_2 = arith.constant 0 : index
    %c0_3 = arith.constant 0 : index
    %2 = vector.load %arg3[%c0_2, %c0_3] : memref<64x32xf32, #tpu.memory_space<vmem>>, vector<64x32xf32>
    %cst = arith.constant dense<0.000000e+00> : vector<16x32xf32>
    %3 = tpu.matmul %1, %2, %cst {dimension_numbers = #tpu.dot_dimension_numbers<[1], [0], [0], [1], [0, 0, 1, 1], [], []>} : vector<16x64xf32>, vector<64x32xf32>, vector<16x32xf32> -> vector<16x32xf32>
    %c0_4 = arith.constant 0 : index
    %c0_5 = arith.constant 0 : index
    %4 = vector.load %arg2[%c0_4, %c0_5] : memref<2x32xf32, #tpu.memory_space<vmem>>, vector<2x32xf32>
    %c0_6 = arith.constant 0 : index
    %c0_7 = arith.constant 0 : index
    %5 = vector.load %arg4[%c0_6, %c0_7] : memref<32x32xf32, #tpu.memory_space<vmem>>, vector<32x32xf32>
    %cst_8 = arith.constant dense<0.000000e+00> : vector<2x32xf32>
    %6 = tpu.matmul %4, %5, %cst_8 {dimension_numbers = #tpu.dot_dimension_numbers<[1], [0], [0], [1], [0, 0, 1, 1], [], []>} : vector<2x32xf32>, vector<32x32xf32>, vector<2x32xf32> -> vector<2x32xf32>
    %c0_9 = arith.constant 0 : index
    %c0_10 = arith.constant 0 : index
    %7 = vector.load %arg5[%c0_9, %c0_10] : memref<2x32xf32, #tpu.memory_space<vmem>>, vector<1x32xf32>
    %8 = vector.broadcast %7 : vector<1x32xf32> to vector<2x32xf32>
    %9 = arith.addf %6, %8 : vector<2x32xf32>
    %10 = vector.shape_cast %3 : vector<16x32xf32> to vector<2x8x32xf32>
    %11 = vector.shape_cast %9 : vector<2x32xf32> to vector<2x1x32xf32>
    %12 = vector.broadcast %11 : vector<2x1x32xf32> to vector<2x8x32xf32>
    %13 = arith.addf %10, %12 : vector<2x8x32xf32>
    %14 = math.tanh %13 : vector<2x8x32xf32>
    %c1 = arith.constant 1 : index
    %c0_11 = arith.constant 0 : index
    %15 = vector.load %arg5[%c1, %c0_11] : memref<2x32xf32, #tpu.memory_space<vmem>>, vector<1x32xf32>
    %16 = vector.shape_cast %15 : vector<1x32xf32> to vector<1x1x32xf32>
    %17 = vector.shape_cast %16 : vector<1x1x32xf32> to vector<1x1x32xf32>
    %18 = vector.broadcast %17 : vector<1x1x32xf32> to vector<2x1x32xf32>
    "tpu.trace_start"() <{level = 10 : i32, message = "bod,bsd->bos"}> : () -> ()
    %cst_12 = arith.constant dense<0.000000e+00> : vector<2x1x8xf32>
    %19 = tpu.matmul %18, %14, %cst_12 {dimension_numbers = #tpu.dot_dimension_numbers<[2], [2], [1], [1], [0, 0, 0, 1, 1, 1], [0], [0]>} : vector<2x1x32xf32>, vector<2x8x32xf32>, vector<2x1x8xf32> -> vector<2x1x8xf32>
    "tpu.trace_stop"() : () -> ()
    %cst_13 = arith.constant dense<0xFF800000> : vector<2x1xf32>
    %20 = vector.multi_reduction <maximumf>, %19, %cst_13 [2] : vector<2x1x8xf32> to vector<2x1xf32>
    %21 = vector.shape_cast %20 : vector<2x1xf32> to vector<2x1x1xf32>
    %22 = vector.broadcast %21 : vector<2x1x1xf32> to vector<2x1x8xf32>
    %23 = arith.subf %19, %22 : vector<2x1x8xf32>
    %24 = math.exp %23 : vector<2x1x8xf32>
    %cst_14 = arith.constant dense<0.000000e+00> : vector<2x1xf32>
    %25 = vector.multi_reduction <add>, %24, %cst_14 [2] : vector<2x1x8xf32> to vector<2x1xf32>
    %26 = vector.shape_cast %25 : vector<2x1xf32> to vector<2x1x1xf32>
    %27 = tpu.reciprocal %26 {approx = true} : vector<2x1x1xf32> -> vector<2x1x1xf32>
    %28 = vector.broadcast %27 : vector<2x1x1xf32> to vector<2x1x8xf32>
    %29 = arith.mulf %24, %28 : vector<2x1x8xf32>
    %c0_15 = arith.constant 0 : index
    %c0_16 = arith.constant 0 : index
    %c0_17 = arith.constant 0 : index
    %30 = vector.load %arg6[%c0_15, %c0_16, %c0_17] : memref<2x1x8xf32, #tpu.memory_space<vmem>>, vector<2x1x8xf32>
    tpu.vector_store %arg6[%c0_15, %c0_16, %c0_17], %29 {strides = array<i32>} : memref<2x1x8xf32, #tpu.memory_space<vmem>>, vector<2x1x8xf32>,
    return
  }
  func.func @transform_0(%arg0: i32) -> (i32, i32, i32) {
    %c0_i32 = arith.constant 0 : i32
    %c0_i32_0 = arith.constant 0 : i32
    %c0_i32_1 = arith.constant 0 : i32
    return %arg0, %c0_i32, %c0_i32_0 : i32, i32, i32
  }
  func.func @transform_1(%arg0: i32) -> (i32, i32) {
    %c0_i32 = arith.constant 0 : i32
    %c0_i32_0 = arith.constant 0 : i32
    return %arg0, %c0_i32 : i32, i32
  }
  func.func @transform_2(%arg0: i32) -> (i32, i32) {
    %c0_i32 = arith.constant 0 : i32
    %c0_i32_0 = arith.constant 0 : i32
    %c0_i32_1 = arith.constant 0 : i32
    return %c0_i32, %c0_i32_0 : i32, i32
  }
  func.func @transform_3(%arg0: i32) -> (i32, i32) {
    %c0_i32 = arith.constant 0 : i32
    %c0_i32_0 = arith.constant 0 : i32
    %c0_i32_1 = arith.constant 0 : i32
    return %c0_i32, %c0_i32_0 : i32, i32
  }
  func.func @transform_4(%arg0: i32) -> (i32, i32) {
    %c0_i32 = arith.constant 0 : i32
    %c0_i32_0 = arith.constant 0 : i32
    %c0_i32_1 = arith.constant 0 : i32
    return %c0_i32, %c0_i32_0 : i32, i32
  }
  func.func @transform_5(%arg0: i32) -> (i32, i32, i32) {
    %c0_i32 = arith.constant 0 : i32
    %c0_i32_0 = arith.constant 0 : i32
    %c0_i32_1 = arith.constant 0 : i32
    return %arg0, %c0_i32, %c0_i32_0 : i32, i32, i32
  }
}

</mosaic_0001>

<bundles_post_ra>
// kernel: tpu_custom_call.1
= control target key start
LH: loop header
LB: loop body
LE: loop exit
PB: predicated region body
PF: predicated region fallthrough
CT: control target
= control target key end

     0   :  { %v557_v3 = vmov 0.0|0.0   ;;  %vm558_vm0 = vmmov 0   ;;  %v559_v8 = vmov 0.0   ;;  %vm31_vm1 = vcmask 523264   ;;  %s678_s0 = inlined_call_operand.vmem [shape: f32[2,8,64], index: 0, kind: input, shape index: {}]   ;;  %s679_s1 = inlined_call_operand.vmem [shape: f32[2,32], index: 1, kind: input, shape index: {}]   ;;  %s680_s2 = inlined_call_operand.vmem [shape: f32[64,32], index: 2, kind: input, shape index: {}]   ;;  %s681_s3 = inlined_call_operand.vmem [shape: f32[32,32], index: 3, kind: input, shape index: {}]   ;;  %s682_s4 = inlined_call_operand.vmem [shape: f32[2,32], index: 4, kind: input, shape index: {}]   ;;  %s683_s5 = inlined_call_operand.hbm [shape: f32[2,1,8], index: 5, kind: output, shape index: {}]  }
   0x1   :  { %v23_v0 = vld [vmem:[%s680_s2] sm:$0xff]  ;;  %v24_v1 = vld [vmem:[%s680_s2 + $0x8] sm:$0xff]  ;;  %508 = vmatprep.subr.bf16.mxu1 %v557_v3  ;;  %v25_v6 = vld [vmem:[%s680_s2 + $0x10] sm:$0xff]  ;;  %479 = vmatprep.mubr.msk.f32.mxu1 %vm558_vm0, %v559_v8 }
   0x2   :  { %v114_v2 = vld [vmem:[%s681_s3] sm:$0xff]  ;;  %v492_v4 = vpack.c.bf16 %v24_v1, %v23_v0  ;;  %v115_v5 = vld [vmem:[%s681_s3 + $0x8] sm:$0xff]  ;;  %v26_v7 = vld [vmem:[%s680_s2 + $0x18] sm:$0xff] }
   0x3   :  { %v509_v9 = vpack.c.bf16 %v115_v5, %v114_v2  ;;  %v496_v10 = vpack.c.bf16 %v26_v7, %v25_v6  ;;  %v116_v11 = vld [vmem:[%s681_s3 + $0x10] sm:$0xff]  ;;  %v117_v12 = vld [vmem:[%s681_s3 + $0x18] sm:$0xff]  ;;  %v27_v13 = vld [vmem:[%s680_s2 + $0x20] sm:$0xff] }
   0x4   :  { %493 = vmatprep.subr.bf16.mxu0 %v492_v4  ;;  %v28_v14 = vld [vmem:[%s680_s2 + $0x28] sm:$0xff]  ;;  %v512_v15 = vpack.c.bf16 %v117_v12, %v116_v11  ;;  %v21_v16 = vld [vmem:[%s678_s0] sm:$0xff] }
   0x5   :  { %510 = vmatpush3.bf16.msra.mxu1 %v509_v9  ;;  %495 = vmatpush3.bf16.msra.mxu0 %v492_v4  ;;  %v500_v17 = vpack.c.bf16 %v28_v14, %v27_v13 }
   0x6   :  { %511 = vmatprep.subr.bf16.mxu1 %v557_v3  ;;  %497 = vmatprep.subr.bf16.mxu0 %v496_v10 }
   0x7   :  { %10 = vsyncpa [#allocation3], 0  ;;  %v29_v18 = vld [vmem:[%s680_s2 + $0x30] sm:$0xff]  ;;  %v30_v19 = vld [vmem:[%s680_s2 + $0x38] sm:$0xff]  ;;  %468 = vmatprep.mubr.msk.f32.mxu0 %vm31_vm1, %v21_v16  ;;  %vm123_vm2 = vcmask 261120   ;;  %v201_v25 = vlaneseq  ;;  %vm384_vm3 = vcmask 57344  }
   0x8   :  { %v113_v20 = vld [vmem:[%s679_s1] sm:$0x3]  ;;  %v504_v21 = vpack.c.bf16 %v30_v19, %v29_v18  ;;  %v22_v22 = vld [vmem:[%s678_s0 + $0x8] sm:$0xff]  ;;  %v560_v23 = vmov 1966171168  }
   0x9   :  { %513 = vmatpush3.bf16.msra.mxu1 %v512_v15  ;;  %499 = vmatpush3.bf16.msra.mxu0 %v496_v10  ;;  %v199_v24 = vunpack.c.l.s4 %v560_v23  ;;  %v202_v27 = vshrl.u32 %v201_v25, 7  ;;  %v427_v28 = vld [vmem:[%s682_s4] ss:$0 sm:$0xff]  ;;  %v234_v45 = vld [vmem:[%s682_s4 + $0x1] sm:$0x1]  ;;  %s561_s4 = smov [#allocation2]  }
   0xa   :  { %501 = vmatprep.subr.bf16.mxu0 %v500_v17  ;;  %482 = vmatprep.subr.mxu1 %v559_v8  ;;  %s414_s23 = sshll.u32 %s561_s4, 4  ;;  %s415_s23 = int_to_ptr.vmem [resolvable:$true] %s414_s23 }
   0xb   :  { %v200_v26 = vunpack.c.0.s8 %v199_v24  ;;  %v222_v34 = vsub.s32 0, %v202_v27  ;;  %s533_s24 = scalar_lea.vmem %s415_s23, 32  ;;  %p538_p1 = scmp.lt.s32.totalorder %s415_s23, %s415_s23 }
   0xc   :  { %480 = vmatmul.mubr.msk.f32.vlgmr.msra.gmra.mrb[0].mxu1 %vm123_vm2, %v113_v20  ;;  %p534_p0 = scmp.ne.s32.totalorder %s415_s23, %s533_s24  ;;  %p539_p2 = scmp.lt.s32.totalorder %s533_s24, %s533_s24 }
   0xd   :  { %503 = vmatpush3.bf16.msra.mxu0 %v500_v17  ;;  %484 = vmatprep.mubr.msk.f32.mxu1 %vm558_vm0, %v559_v8  ;;  %v203_v29 = vsub.s32 %v200_v26, %v202_v27 }
   0xe   :  { %505 = vmatprep.subr.bf16.mxu0 %v504_v21  ;;  %p540_p3 = por %p539_p2, %p538_p1 }
  0x10   :  { %p541_p4 = pnand %p540_p3, %p534_p0 }
  0x11   :  { %507 = vmatpush3.bf16.msra.mxu0 %v504_v21 }
  0x14   :  { %469 = vmatmul.mubr.msk.f32.vlgmr.msra.gmra.mrb[0].mxu0 %vm31_vm1, %v22_v22 }
  0xdf   :  { %v193_v30 = vpop.f32.mrb[0].mxu1 }
  0xe0   :  { %v194_v31 = vadd.f32 %v427_v28, %v193_v30  ;;  %v481_v32 = vpop.f32.mrb[1].mxu1 }
  0xe2   :  { %v204_v33 = vrot.slane %v194_v31, %v203_v29 }
  0xe4   :  { %v205_v35 = vcombine.high %v204_v33, %v204_v33  ;;  %v212_v36 = vrot.slane %v204_v33, %v203_v29 }
  0xe6   :  { %v219_v37 = vrot.slane %v205_v35, %v203_v29  ;;  %v223_v38 = vrot.slane %v212_v36, %v222_v34 }
  0xe7   :  { %v470_v39 = vpop.f32.mrb[0].mxu0 }
  0xe8   :  { %v227_v40 = vrot.slane %v219_v37, %v222_v34  ;;  %v104_v41 = vpop.f32.mrb[1].mxu0 }
  0xe9   :  { %v230_v42 = vadd.f32 %v223_v38, %v104_v41 }
  0xea   :  { %v231_v43 = vadd.f32 %v470_v39, %v227_v40 }
  0xeb   :  { %521 = vtanh.f32 %v230_v42 }
  0xec   :  { %523 = vtanh.f32 %v231_v43 }
  0xf5   :  { %v522_v44 = vpop.eup %521 }
  0xf6   :  { %483 = vmatpush3.xpose.msk.msra.mxu1 %vm123_vm2, %v522_v44  ;;  %v524_v46 = vpop.eup %523 }
  0xf7   :  { %487 = vmatprep.subr.mxu1 %v559_v8 }
  0xf9   :  { %485 = vmatmul.mubr.msk.f32.vlgmr.msra.gmra.mrb[2].mxu1 %vm123_vm2, %v234_v45 }
  0xfa   :  { %488 = vmatpush3.xpose.msk.msra.mxu1 %vm123_vm2, %v524_v46  ;;  %489 = vmatprep.mubr.msk.f32.mxu1 %vm558_vm0, %v559_v8 }
  0xfd   :  { %490 = vmatmul.mubr.msk.f32.vlgmr.msra.gmra.mrb[4].mxu1 %vm123_vm2, %v234_v45 }
 0x1cc   :  { %v307_v47 = vpop.f32.mrb[2].mxu1 }
 0x1cd   :  { %v486_v48 = vpop.f32.mrb[3].mxu1  ;;  %v385_v49 = vsel %vm384_vm3, %v307_v47, -inf }
 0x1ce   :  { %386 = vmax.xlane.f32.xlu0 %v385_v49 }
 0x1d0   :  { %v380_v50 = vpop.f32.mrb[4].mxu1 }
 0x1d1   :  { %v491_v51 = vpop.f32.mrb[5].mxu1  ;;  %v388_v52 = vsel %vm384_vm3, %v380_v50, -inf }
 0x1d2   :  { %389 = vmax.xlane.f32.xlu0 %v388_v52 }
 0x25b   :  { %v387_v53 = vpop.xlane.xlu0 %386 }
 0x25c   :  { %v391_v54 = vsub.f32 %v307_v47, %v387_v53 }
 0x25e   :  { %v393_v55 = vmul.f32 1.442695, %v391_v54 }
 0x25f   :  { %v390_v56 = vpop.xlane.xlu0 %389 }
 0x260   :  { %525 = vpow2.f32 %v393_v55  ;;  %v392_v57 = vsub.f32 %v380_v50, %v390_v56 }
 0x262   :  { %v395_v58 = vmul.f32 1.442695, %v392_v57 }
 0x264   :  { %527 = vpow2.f32 %v395_v58 }
 0x26a   :  { %v526_v59 = vpop.eup %525 }
 0x26b   :  { %v397_v60 = vsel %vm384_vm3, %v526_v59, 0.0 }
 0x26c   :  { %398 = vadd.xlane.f32.xlu1 %v397_v60 }
 0x26e   :  { %v528_v61 = vpop.eup %527 }
 0x26f   :  { %v400_v62 = vsel %vm384_vm3, %v528_v61, 0.0 }
 0x270   :  { %401 = vadd.xlane.f32.xlu1 %v400_v62 }
 0x2f9   :  { %v399_v63 = vpop.xlane.xlu1 %398 }
 0x2fa   :  { %529 = vrcp.f32 %v399_v63 }
 0x2fd   :  { %v402_v0 = vpop.xlane.xlu1 %401 }
 0x2fe   :  { %531 = vrcp.f32 %v402_v0 }
 0x304   :  { %v530_v1 = vpop.eup %529 }
 0x305   :  { %v405_v2 = vmul.f32 %v530_v1, %v526_v59 }
 0x307   :  { %407 = vst.msk [vmem:[#allocation2] sm:$0x1] %vm384_vm3, %v405_v2 }
 0x308   :  { %v532_v3 = vpop.eup %531 }
 0x309   :  { %v406_v4 = vmul.f32 %v532_v3, %v528_v61 }
 0x30b   :  { %408 = vst.msk [vmem:[#allocation2 + $0x1] sm:$0x1] %vm384_vm3, %v406_v4 }
 0x30c   :  { %544 = shalt.err (!%p541_p4)
}
 0x30d   :  { %s545_s27 = scalar_lea.hbm %s683_s5, 32 }
 0x30e   :  { %p546_p5 = scmp.ne.s32.totalorder %s683_s5, %s545_s27  ;;  %p549_p6 = scmp.lt.u32.totalorder %s545_s27, %s683_s5 }
 0x310   :  { %p551_p7 = pnand %p549_p6, %p546_p5 }
 0x312   :  { %554 = shalt.err (!%p551_p7)
}
 0x313   :  { %s562_s7 = smov 16   ;;  %s563_s8 = smov 1  }
 0x314   :  { %420 = dma.vmem_to_hbm [thread:$0]  %s415_s23, 32, %s683_s5, [#allocation3], %s562_s7, %s562_s7, %s563_s8  }
 0x315   :  { %555 = dma.done.wait [#allocation3], 32  }
 0x316   :  { %556 = vsyncadd [#allocation3], 4294967264 }
 0x317   :  { %424 = vsyncpa [#allocation3], 1 }

</bundles_post_ra>
